<compile_context>
chip_gen: v5e
topology: v5e:2x2
jax: 0.10.0
libtpu: 0.0.40
codegen_flags: <defaults>
</compile_context>

<pallas_src>
import random

import jax
import jax.numpy as jnp
from jax.experimental import pallas as pl
from jax.experimental.pallas import tpu as pltpu


# ----------------------------------------------------------------------------
# Identity noise layer as a Pallas kernel (single HBM -> HBM DMA)
# ----------------------------------------------------------------------------

def _identity_dma_kernel(x_hbm_ref, o_hbm_ref, sem):
    # One DMA copies the whole input buffer to the whole output buffer.
    # No VMEM staging, no grid, no (8,128) tiling constraints.
    cp = pltpu.make_async_copy(x_hbm_ref, o_hbm_ref, sem)
    cp.start()
    cp.wait()


def _identity_copy(image):
    """Materialized identity: one HBM->HBM DMA at roofline, any shape/dtype."""
    nbytes = image.size * image.dtype.itemsize
    return pl.pallas_call(
        _identity_dma_kernel,
        out_shape=jax.ShapeDtypeStruct(image.shape, image.dtype),
        in_specs=[pl.BlockSpec(memory_space=pl.ANY)],
        out_specs=pl.BlockSpec(memory_space=pl.ANY),
        scratch_shapes=[pltpu.SemaphoreType.DMA],
        cost_estimate=pl.CostEstimate(
            flops=0, transcendentals=0, bytes_accessed=2 * nbytes),
    )(image)


def identity_noise_layer(image_and_cover):
    """Pallas equivalent of noise_layers.Identity: returns the noised image unchanged."""
    image, _cover = image_and_cover
    return _identity_copy(image)


# ----------------------------------------------------------------------------
# Combined
# ----------------------------------------------------------------------------

class Combined:
    """JAX/Pallas port of network.noise_layers.combined.Combined."""

    def __init__(self, layer_list=None):
        if layer_list is None:
            layer_list = [identity_noise_layer]
        self.list = layer_list
        self.current_index = 0

    def forward(self, image_and_cover, rng=None):
        # The original get_random_int is host-side randomness; reproduce it on
        # the host so no device sync or traced->Python conversion happens.
        if len(self.list) == 1:
            idx = 0  # randint(0, 0) is deterministically 0
        else:
            host_rng = rng if isinstance(rng, random.Random) else random
            idx = host_rng.randint(0, len(self.list) - 1)
        self.current_index = idx
        return self.list[idx](image_and_cover)

    __call__ = forward


if __name__ == "__main__":
    key = jax.random.PRNGKey(0)
    k_img, k_cov = jax.random.split(key, 2)

    # Small NCHW shapes: batch=2, channels=4, spatial=16x16.
    image = jax.random.normal(k_img, (2, 4, 16, 16), dtype=jnp.float32)
    cover = jax.random.normal(k_cov, (2, 4, 16, 16), dtype=jnp.float32)

    combined = Combined()  # default list = [Identity()] (Pallas DMA identity)
    out = combined((image, cover))
    out = jax.block_until_ready(out)

    # Verify Identity semantics: output equals the noised image exactly.
    assert out.shape == image.shape and out.dtype == image.dtype
    assert bool(jnp.all(out == image))

    print("KERNEL_OK")
</pallas_src>

<mosaic_0001>
module attributes {stable_mosaic.version = 11 : i64} {
  func.func @_identity_dma_kernel(%arg0: memref<2x4x16x16xf32, #tpu.memory_space<any>>, %arg1: memref<2x4x16x16xf32, #tpu.memory_space<any>>, %arg2: memref<!tpu.dma_semaphore, #tpu.memory_space<semaphore_mem>>) attributes {dimension_semantics = [], scalar_prefetch = 0 : i64, scratch_operands = 1 : i64, tpu.core_type = #tpu.core_type<tc>} {
    tpu.enqueue_dma source(%arg0 : memref<2x4x16x16xf32, #tpu.memory_space<any>>) target(%arg1 : memref<2x4x16x16xf32, #tpu.memory_space<any>>) target_semaphore(%arg2 : memref<!tpu.dma_semaphore, #tpu.memory_space<semaphore_mem>>)
    tpu.wait_dma2 semaphore(%arg2 : memref<!tpu.dma_semaphore, #tpu.memory_space<semaphore_mem>>) src(%arg0 : memref<2x4x16x16xf32, #tpu.memory_space<any>>) dst(%arg1 : memref<2x4x16x16xf32, #tpu.memory_space<any>>)
    return
  }
}

</mosaic_0001>

<bundles_post_ra>
// kernel: tpu_custom_call.1
= control target key start
LH: loop header
LB: loop body
LE: loop exit
PB: predicated region body
PF: predicated region fallthrough
CT: control target
= control target key end

     0   :  { %s34_s12 = smov [#allocation2]   ;;  %s35_s13 = smov [#allocation3]   ;;  %s53_s0 = inlined_call_operand.hbm [shape: f32[2,4,16,16], index: 0, kind: input, shape index: {}]   ;;  %s54_s1 = inlined_call_operand.hbm [shape: f32[2,4,16,16], index: 1, kind: output, shape index: {}]  }
   0x1   :  { %s10_s8 = sshll.u32 %s53_s0, 4  ;;  %s12_s11 = sshll.u32 %s54_s1, 4  ;;  %s11_s8 = int_to_ptr.hbm [resolvable:$true] %s10_s8  ;;  %s13_s11 = int_to_ptr.hbm [resolvable:$true] %s12_s11 }
   0x2   :  { %s36_s14 = smov 0  }
   0x3   :  { %16 = dma.general %s11_s8, 2048, %s13_s11, %s34_s12, %s35_s13, [#allocation4], %s36_s14, 0  }
   0x4   :  { %32 = dma.done.wait [#allocation2], 2048 }
   0x5   :  { %33 = vsyncadd [#allocation2], 4294965248 }
   0x6   :  { %22 = vsyncmov [#allocation2] }
   0x9   :  { %s23_s15 = vpop.sfrf %22 }
   0xa   :  { %p28_p0 = scmp.ne.s32.totalorder %s23_s15, 0 }
   0xc   :  { %27 = shalt.err (%p28_p0)  }

</bundles_post_ra>
